<compile_context>
chip_gen: v7x
topology: tpu7x:2x2x1
jax: 0.10.0
libtpu: 0.0.40
codegen_flags: <defaults>
</compile_context>

<pallas_src>
import math
import functools

import jax
import jax.numpy as jnp
from jax.experimental import pallas as pl
from jax.experimental.pallas import tpu as pltpu


# --------------------------------------------------------------------------
# Kernel: elementwise add of a resident PE tile, optional inverted dropout.
# --------------------------------------------------------------------------
def _add_pe_kernel(pe_ref, x_ref, o_ref, *, dropout_p, training, seed):
    x = x_ref[...]                     # (B, tF) in x.dtype
    pe = pe_ref[...]                   # (1, tF) float32

    # Add in f32 and cast once (slightly more accurate for bf16 inputs,
    # no-op for f32).
    y = x.astype(jnp.float32) + pe     # broadcast over batch rows

    if training and dropout_p > 0.0:
        # Per-tile PRNG stream; integer-threshold compare on raw bits.
        pltpu.prng_seed(seed + pl.program_id(0))
        bits = pltpu.bitcast(pltpu.prng_random_bits(y.shape), jnp.uint32)
        thresh = jnp.uint32(min(int(round(dropout_p * 4294967296.0)), 4294967295))
        keep = bits >= thresh                              # P(keep) = 1 - p
        scale = jnp.float32(1.0 / (1.0 - dropout_p))
        y = jnp.where(keep, y * scale, jnp.float32(0.0))

    o_ref[...] = y.astype(o_ref.dtype)


# --------------------------------------------------------------------------
# Host-side helpers.
# --------------------------------------------------------------------------
def _make_pe_table(seq_len, d_model):
    """The module's registered buffer (note: frequency base is 1000, not 10000)."""
    pos = jnp.arange(seq_len, dtype=jnp.float32)[:, None]
    div = jnp.exp(
        jnp.arange(0, d_model, 2, dtype=jnp.float32) * (-math.log(1000.0) / d_model)
    )
    ang = pos * div
    pe = jnp.zeros((seq_len, d_model), jnp.float32)
    pe = pe.at[:, 0::2].set(jnp.sin(ang))
    pe = pe.at[:, 1::2].set(jnp.cos(ang))
    return pe


def _choose_flat_tile(total, batch, itemsize, budget_bytes=12 * 1024 * 1024):
    """Pick a lane-dense tile of the flat S*D axis that keeps the
    double-buffered (x-in + out + pe) working set under `budget_bytes`."""
    per_elem = 2 * (2 * batch * itemsize + 4)      # 2 bufs * (in + out + pe row)
    if total * per_elem <= budget_bytes:
        return total                               # whole thing: one grid step
    t = max(128, (budget_bytes // per_elem) // 128 * 128)
    # Prefer an even divisor (no ragged final block); fall back to masked edge.
    for cand in range(t, 127, -128):
        if total % cand == 0:
            return cand
    return t


def positional_encoding(x, *, dropout_p=0.1, training=False, seed=0):
    """x: (batch, seq_len, d_model). Returns x + PE[:seq_len] (+ dropout)."""
    B, S, D = x.shape
    total = S * D

    pe2 = _make_pe_table(S, D).reshape(1, total)   # (1, S*D) float32, built once
    x2 = x.reshape(B, total)                       # lane-dense flat layout

    tF = _choose_flat_tile(total, B, jnp.dtype(x.dtype).itemsize)
    n_tiles = pl.cdiv(total, tF)

    kernel = functools.partial(
        _add_pe_kernel,
        dropout_p=float(dropout_p),
        training=bool(training),
        seed=int(seed),
    )

    out2 = pl.pallas_call(
        kernel,
        out_shape=jax.ShapeDtypeStruct((B, total), x.dtype),
        grid=(n_tiles,),
        in_specs=[
            pl.BlockSpec((1, tF), lambda f: (0, f)),   # PE tile (shared over batch)
            pl.BlockSpec((B, tF), lambda f: (0, f)),   # x tile
        ],
        out_specs=pl.BlockSpec((B, tF), lambda f: (0, f)),
        compiler_params=pltpu.CompilerParams(
            dimension_semantics=("parallel",),
            vmem_limit_bytes=32 * 1024 * 1024,         # headroom under 64 MiB (v7x)
        ),
    )(pe2, x2)

    return out2.reshape(B, S, D)


# --------------------------------------------------------------------------
# Plain-JAX reference of the PyTorch forward (eval mode).
# --------------------------------------------------------------------------
def _reference(x):
    B, S, D = x.shape
    pos = jnp.arange(S, dtype=jnp.float32)[:, None]
    div = jnp.exp(jnp.arange(0, D, 2, dtype=jnp.float32) * (-math.log(1000.0) / D))
    pos_div = pos * div
    pe = jnp.zeros((S, D), jnp.float32)
    pe = pe.at[:, 0::2].set(jnp.sin(pos_div))
    pe = pe.at[:, 1::2].set(jnp.cos(pos_div))
    return x + pe[None, :, :].astype(x.dtype)


if __name__ == "__main__":
    key = jax.random.PRNGKey(0)
    B, S, D = 2, 8, 32  # batch, seq_len, d_model
    x = jax.random.normal(key, (B, S, D), dtype=jnp.float32)

    out = positional_encoding(x, dropout_p=0.1, training=False)
    out = jax.block_until_ready(out)

    ref = _reference(x)
    assert out.shape == (B, S, D)
    assert jnp.allclose(out, ref, atol=1e-5, rtol=1e-5), "mismatch vs reference"

    print("KERNEL_OK")
</pallas_src>

<mosaic_0001>
module attributes {stable_mosaic.version = 11 : i64} {
  func.func @_add_pe_kernel(%arg0: i32, %arg1: memref<1x256xf32, #tpu.memory_space<vmem>>, %arg2: memref<2x256xf32, #tpu.memory_space<vmem>>, %arg3: memref<2x256xf32, #tpu.memory_space<vmem>>) attributes {dimension_semantics = [#tpu.dimension_semantics<parallel>], iteration_bounds = array<i64: 1>, scalar_prefetch = 0 : i64, scratch_operands = 0 : i64, tpu.core_type = #tpu.core_type<tc>, window_params = [{transform_indices = @transform_0, window_bounds = array<i64: 1, 256>}, {transform_indices = @transform_1, window_bounds = array<i64: 2, 256>}, {transform_indices = @transform_2, window_bounds = array<i64: 2, 256>}]} {
    %c0 = arith.constant 0 : index
    %c0_0 = arith.constant 0 : index
    %0 = vector.load %arg2[%c0, %c0_0] : memref<2x256xf32, #tpu.memory_space<vmem>>, vector<2x256xf32>
    %c0_1 = arith.constant 0 : index
    %c0_2 = arith.constant 0 : index
    %1 = vector.load %arg1[%c0_1, %c0_2] : memref<1x256xf32, #tpu.memory_space<vmem>>, vector<1x256xf32>
    %2 = vector.broadcast %1 : vector<1x256xf32> to vector<2x256xf32>
    %3 = arith.addf %0, %2 : vector<2x256xf32>
    %c0_3 = arith.constant 0 : index
    %c0_4 = arith.constant 0 : index
    %4 = vector.load %arg3[%c0_3, %c0_4] : memref<2x256xf32, #tpu.memory_space<vmem>>, vector<2x256xf32>
    tpu.vector_store %arg3[%c0_3, %c0_4], %3 {strides = array<i32>} : memref<2x256xf32, #tpu.memory_space<vmem>>, vector<2x256xf32>,
    return
  }
  func.func @transform_0(%arg0: i32) -> (i32, i32) {
    %c0_i32 = arith.constant 0 : i32
    %c0_i32_0 = arith.constant 0 : i32
    return %c0_i32, %arg0 : i32, i32
  }
  func.func @transform_1(%arg0: i32) -> (i32, i32) {
    %c0_i32 = arith.constant 0 : i32
    %c0_i32_0 = arith.constant 0 : i32
    return %c0_i32, %arg0 : i32, i32
  }
  func.func @transform_2(%arg0: i32) -> (i32, i32) {
    %c0_i32 = arith.constant 0 : i32
    %c0_i32_0 = arith.constant 0 : i32
    return %c0_i32, %arg0 : i32, i32
  }
}

</mosaic_0001>

<bundles_post_ra>
// kernel: tpu_custom_call.1
= control target key start
LH: loop header
LB: loop body
LE: loop exit
PB: predicated region body
PF: predicated region fallthrough
CT: control target
= control target key end

     0   :  { %7 = vsyncpa [#allocation3], 0  ;;  %s205_s0 = inlined_call_operand.hbm [shape: f32[1,256], index: 0, kind: input, shape index: {}]   ;;  %s206_s1 = inlined_call_operand.hbm [shape: f32[2,256], index: 1, kind: input, shape index: {}]   ;;  %s207_s2 = inlined_call_operand.hbm [shape: f32[2,256], index: 2, kind: output, shape index: {}]  }
   0x1   :  { %8 = vsyncpa [#allocation6], 0 }
   0x2   :  { %9 = vsyncpa [#allocation4], 0  ;;  %s150_s9 = smov [#allocation2]   ;;  %s151_s11 = smov [#allocation5]  }
   0x3   :  { %s16_s10 = sshll.u32 %s150_s9, 4  ;;  %s26_s12 = sshll.u32 %s151_s11, 4  ;;  %s17_s10 = int_to_ptr.vmem [resolvable:$true] %s16_s10  ;;  %s27_s12 = int_to_ptr.vmem [resolvable:$true] %s26_s12 }
   0x4   :  { %s78_s15 = scalar_lea.hbm %s205_s0, 32 }
   0x5   :  { %p79_p0 = scmp.ne.s32.totalorder %s205_s0, %s78_s15  ;;  %p82_p1 = scmp.lt.u32.totalorder %s78_s15, %s205_s0 }
   0x7   :  { %p84_p2 = pnand %p82_p1, %p79_p0 }
   0x9   :  { %87 = shalt.err (!%p84_p2)
}
   0xa   :  { %s88_s20 = scalar_lea.vmem %s17_s10, 32  ;;  %p93_p4 = scmp.lt.s32.totalorder %s17_s10, %s17_s10 }
   0xb   :  { %p89_p3 = scmp.ne.s32.totalorder %s17_s10, %s88_s20  ;;  %p94_p5 = scmp.lt.s32.totalorder %s88_s20, %s88_s20 }
   0xd   :  { %p95_p6 = por %p94_p5, %p93_p4 }
   0xf   :  { %p96_p7 = pnand %p95_p6, %p89_p3 }
  0x11   :  { %99 = shalt.err (!%p96_p7)
}
  0x12   :  { %19 = dma.hbm_to_vmem [thread:$0]  %s205_s0, 32, %s17_s10, [#allocation3]  }
  0x13   :  { %s100_s25 = scalar_lea.hbm %s206_s1, 64 }
  0x14   :  { %p101_p8 = scmp.ne.s32.totalorder %s206_s1, %s100_s25  ;;  %p104_p9 = scmp.lt.u32.totalorder %s100_s25, %s206_s1 }
  0x16   :  { %p106_p10 = pnand %p104_p9, %p101_p8 }
  0x18   :  { %109 = shalt.err (!%p106_p10)
}
  0x19   :  { %s110_s30 = scalar_lea.vmem %s27_s12, 64  ;;  %p115_p12 = scmp.lt.s32.totalorder %s27_s12, %s27_s12 }
  0x1a   :  { %p111_p11 = scmp.ne.s32.totalorder %s27_s12, %s110_s30  ;;  %p116_p13 = scmp.lt.s32.totalorder %s110_s30, %s110_s30 }
  0x1c   :  { %p117_p0 = por %p116_p13, %p115_p12 }
  0x1e   :  { %p118_p1 = pnand %p117_p0, %p111_p11 }
  0x20   :  { %121 = shalt.err (!%p118_p1)
}
  0x21   :  { %29 = dma.hbm_to_vmem [thread:$0]  %s206_s1, 64, %s27_s12, [#allocation6]  }
  0x22   :  { %144 = dma.done.wait [#allocation3], 32  }
  0x23   :  { %145 = vsyncadd [#allocation3], 4294967264 }
  0x24   :  { %146 = dma.done.wait [#allocation6], 64  }
  0x25   :  { %147 = vsyncadd [#allocation6], 4294967232  ;;  %v39_v0 = vlaneseq  ;;  %v152_v1 = vmov 1983009808   ;;  %v37_v7 = vld [vmem:[#allocation2] sm:$0x3] }
  0x26   :  { %v49_v2 = vunpack.c.l.s4 %v152_v1  ;;  %v36_v12 = vld [vmem:[#allocation5] sm:$0xf]  ;;  %s153_s4 = smov [#allocation7]  }
  0x27   :  { %v40_v3 = vshrl.u32 %v39_v0, 7  ;;  %s64_s5 = sshll.u32 %s153_s4, 4  ;;  %s65_s5 = int_to_ptr.vmem [resolvable:$true] %s64_s5 }
  0x28   :  { %v50_v6 = vunpack.c.0.s8 %v49_v2  ;;  %s122_s1 = scalar_lea.vmem %s65_s5, 64  ;;  %p127_p3 = scmp.lt.s32.totalorder %s65_s5, %s65_s5 }
  0x29   :  { %v41_v4 = vsub.s32 0, %v40_v3  ;;  %v45_v5 = vsub.s32 1, %v40_v3  ;;  %p123_p2 = scmp.ne.s32.totalorder %s65_s5, %s122_s1  ;;  %p128_p4 = scmp.lt.s32.totalorder %s122_s1, %s122_s1 }
  0x2a   :  { %v53_v10 = vsub.s32 %v50_v6, %v40_v3 }
  0x2b   :  { %v42_v8 = vrot.slane %v37_v7, %v41_v4  ;;  %v46_v9 = vrot.slane %v37_v7, %v45_v5  ;;  %p129_p5 = por %p128_p4, %p127_p3 }
  0x2d   :  { %v47_v11 = vcombine.low %v42_v8, %v46_v9  ;;  %p130_p6 = pnand %p129_p5, %p123_p2 }
  0x2f   :  { %v54_v13 = vrot.slane %v47_v11, %v53_v10 }
  0x31   :  { %v56_v14 = vadd.f32 %v54_v13, %v36_v12 }
  0x33   :  { %57 = vst [vmem:[#allocation7] sm:$0xf] %v56_v14 }
  0x34   :  { %133 = shalt.err (!%p130_p6)
}
  0x35   :  { %s134_s8 = scalar_lea.hbm %s207_s2, 64 }
  0x36   :  { %p135_p7 = scmp.ne.s32.totalorder %s207_s2, %s134_s8  ;;  %p138_p8 = scmp.lt.u32.totalorder %s134_s8, %s207_s2 }
  0x38   :  { %p140_p9 = pnand %p138_p8, %p135_p7 }
  0x3a   :  { %143 = shalt.err (!%p140_p9)
}
  0x3b   :  { %67 = dma.vmem_to_hbm [thread:$0]  %s65_s5, 64, %s207_s2, [#allocation4]  }
  0x3c   :  { %148 = dma.done.wait [#allocation4], 64  }
  0x3d   :  { %149 = vsyncadd [#allocation4], 4294967232 }
  0x3e   :  { %71 = vsyncpa [#allocation3], 1 }
  0x3f   :  { %72 = vsyncpa [#allocation6], 1 }
  0x40   :  { %73 = vsyncpa [#allocation4], 1 }

</bundles_post_ra>
